<compile_context>
chip_gen: v6e
topology: v6e:2x2x1
jax: 0.10.0
libtpu: 0.0.40
codegen_flags: <defaults>
</compile_context>

<pallas_src>
import jax
import jax.numpy as jnp
from jax.experimental import pallas as pl
from jax.experimental.pallas import tpu as pltpu

PARAM_LEN = 100


def _uniform01(seed_u32, shape):
    """Counter-based hash RNG -> uniform [0, 1) float32 of `shape`.

    Uses only plain jnp/lax ops so it lowers under both Mosaic (TPU) and the
    Pallas interpreter; distributionally matches torch.rand_like (not bit-exact).
    """
    lane = jax.lax.broadcasted_iota(jnp.int32, shape, len(shape) - 1).astype(jnp.uint32)
    x = lane * jnp.uint32(0x9E3779B9) + seed_u32 * jnp.uint32(0x85EBCA6B)
    # murmur3 finalizer (bit mix)
    x = x ^ (x >> 16)
    x = x * jnp.uint32(0x7FEB352D)
    x = x ^ (x >> 15)
    x = x * jnp.uint32(0x846CA68B)
    x = x ^ (x >> 16)
    # Mantissa-bitcast trick: build a float in [1, 2), subtract 1 -> [0, 1).
    mant = (x >> 9) | jnp.uint32(0x3F800000)
    return jax.lax.bitcast_convert_type(mant, jnp.float32) - jnp.float32(1.0)


def _model2_kernel(seed_ref, param_ref, preds_ref, sum_ref):
    # seed_ref : SMEM (1,)   int32   -- RNG seed
    # param_ref: VMEM (1,100) f32    -- parameter (canonical layout)
    # preds_ref: VMEM (1,100) f32    -- preds output
    # sum_ref  : VMEM (1,1)   f32    -- |sum(preds)|
    seed = seed_ref[0].astype(jnp.uint32)
    u01 = _uniform01(seed, (1, PARAM_LEN))
    preds = param_ref[...] + u01 * jnp.float32(0.01)
    preds_ref[...] = preds
    sum_ref[...] = jnp.abs(jnp.sum(preds, keepdims=True))


def model2_forward(x, param2d, seed):
    """JAX/Pallas equivalent of MyCustomModel2.forward (single evaluation).

    `x` is accepted (to match the PyTorch signature) but ignored, exactly like
    the reference module. `param2d` is the parameter stored in its canonical
    (1, 100) layout (padding/reshaping done once at init, not per call).
    """
    del x  # unused, same as the PyTorch module
    seed_arr = jnp.asarray([seed], dtype=jnp.int32)

    preds2d, sum2d = pl.pallas_call(
        _model2_kernel,
        out_shape=(
            jax.ShapeDtypeStruct((1, PARAM_LEN), jnp.float32),
            jax.ShapeDtypeStruct((1, 1), jnp.float32),
        ),
        in_specs=[
            pl.BlockSpec(memory_space=pltpu.MemorySpace.SMEM),
            pl.BlockSpec(memory_space=pltpu.MemorySpace.VMEM),
        ],
        out_specs=(
            pl.BlockSpec(memory_space=pltpu.MemorySpace.VMEM),
            pl.BlockSpec(memory_space=pltpu.MemorySpace.VMEM),
        ),
    )(seed_arr, param2d)

    return ({"preds": preds2d[0]}, sum2d[0, 0])


def _model2_batched_kernel(seeds_ref, param_ref, preds_ref, sum_ref):
    # seeds_ref: SMEM (N,) int32 (scalar-prefetched); one grid step per seed.
    i = pl.program_id(0)
    seed = seeds_ref[i].astype(jnp.uint32)
    u01 = _uniform01(seed, (1, PARAM_LEN))
    preds = param_ref[...] + u01 * jnp.float32(0.01)
    preds_ref[...] = preds
    sum_ref[...] = jnp.abs(jnp.sum(preds, keepdims=True))


def model2_forward_batched(x, param2d, seeds):
    """N independent forward evaluations (one per seed) in a single launch.

    Amortizes the ~0.35 us per-pallas_call overhead; the batch axis is marked
    "parallel" so v7x's two TensorCores split the seeds.
    """
    del x  # unused
    n = seeds.shape[0]
    grid_spec = pltpu.PrefetchScalarGridSpec(
        num_scalar_prefetch=1,
        grid=(n,),
        in_specs=[pl.BlockSpec((1, PARAM_LEN), lambda i, seeds: (0, 0))],
        out_specs=(
            pl.BlockSpec((1, PARAM_LEN), lambda i, seeds: (i, 0)),
            pl.BlockSpec((1, 1), lambda i, seeds: (i, 0)),
        ),
    )
    preds, sums = pl.pallas_call(
        _model2_batched_kernel,
        grid_spec=grid_spec,
        out_shape=(
            jax.ShapeDtypeStruct((n, PARAM_LEN), jnp.float32),
            jax.ShapeDtypeStruct((n, 1), jnp.float32),
        ),
        compiler_params=pltpu.CompilerParams(dimension_semantics=("parallel",)),
    )(seeds.astype(jnp.int32), param2d)
    return preds, sums[:, 0]


if __name__ == "__main__":
    key = jax.random.PRNGKey(0)

    # Deterministic parameter init: torch.ones(100), stored once in the
    # kernel's canonical (1, 100) layout.
    param2d = jnp.ones((1, PARAM_LEN), dtype=jnp.float32)

    # Small example input consistent with the module (forward ignores it).
    x = jax.random.normal(key, (2, PARAM_LEN), dtype=jnp.float32)

    # --- single forward ---
    out_dict, loss = model2_forward(x, param2d, seed=0)
    preds = jax.block_until_ready(out_dict["preds"])
    loss = jax.block_until_ready(loss)

    assert preds.shape == (PARAM_LEN,)
    assert bool(jnp.all(preds >= 1.0)) and bool(jnp.all(preds < 1.01 + 1e-5))
    assert abs(float(loss) - float(jnp.sum(preds))) < 1e-3

    # --- batched forward (many seeds, one launch) ---
    seeds = jnp.arange(8, dtype=jnp.int32)
    preds_b, losses_b = model2_forward_batched(x, param2d, seeds)
    preds_b = jax.block_until_ready(preds_b)
    losses_b = jax.block_until_ready(losses_b)

    assert preds_b.shape == (8, PARAM_LEN) and losses_b.shape == (8,)
    assert bool(jnp.all(preds_b >= 1.0)) and bool(jnp.all(preds_b < 1.01 + 1e-5))
    ref_losses = jnp.abs(jnp.sum(preds_b, axis=1))
    assert float(jnp.max(jnp.abs(losses_b - ref_losses))) < 1e-3

    print("KERNEL_OK")
</pallas_src>

<mosaic_0001>
module attributes {stable_mosaic.version = 11 : i64} {
  func.func @_model2_kernel(%arg0: memref<1xi32, #tpu.memory_space<smem>>, %arg1: memref<1x100xf32, #tpu.memory_space<vmem>>, %arg2: memref<1x100xf32, #tpu.memory_space<vmem>>, %arg3: memref<1x1xf32, #tpu.memory_space<vmem>>) attributes {dimension_semantics = [], scalar_prefetch = 0 : i64, scratch_operands = 0 : i64, tpu.core_type = #tpu.core_type<tc>} {
    %c0 = arith.constant 0 : index
    %0 = memref.load %arg0[%c0] : memref<1xi32, #tpu.memory_space<smem>>
    %1 = tpu.iota {dimensions = array<i32: 1>} : vector<1x100xi32>
    %c-1640531527_i32 = arith.constant -1640531527 : i32
    %2 = vector.broadcast %c-1640531527_i32 : i32 to vector<1x100xi32>
    %3 = arith.muli %1, %2 : vector<1x100xi32>
    %c-2048144789_i32 = arith.constant -2048144789 : i32
    %4 = arith.muli %0, %c-2048144789_i32 : i32
    %5 = vector.broadcast %4 : i32 to vector<1x100xi32>
    %6 = arith.addi %3, %5 : vector<1x100xi32>
    %c16_i32 = arith.constant 16 : i32
    %7 = vector.broadcast %c16_i32 : i32 to vector<1x100xi32>
    %8 = arith.shrui %6, %7 : vector<1x100xi32>
    %9 = arith.xori %6, %8 : vector<1x100xi32>
    %c2146121005_i32 = arith.constant 2146121005 : i32
    %10 = vector.broadcast %c2146121005_i32 : i32 to vector<1x100xi32>
    %11 = arith.muli %9, %10 : vector<1x100xi32>
    %c15_i32 = arith.constant 15 : i32
    %12 = vector.broadcast %c15_i32 : i32 to vector<1x100xi32>
    %13 = arith.shrui %11, %12 : vector<1x100xi32>
    %14 = arith.xori %11, %13 : vector<1x100xi32>
    %c-2073254261_i32 = arith.constant -2073254261 : i32
    %15 = vector.broadcast %c-2073254261_i32 : i32 to vector<1x100xi32>
    %16 = arith.muli %14, %15 : vector<1x100xi32>
    %c16_i32_0 = arith.constant 16 : i32
    %17 = vector.broadcast %c16_i32_0 : i32 to vector<1x100xi32>
    %18 = arith.shrui %16, %17 : vector<1x100xi32>
    %19 = arith.xori %16, %18 : vector<1x100xi32>
    %c9_i32 = arith.constant 9 : i32
    %20 = vector.broadcast %c9_i32 : i32 to vector<1x100xi32>
    %21 = arith.shrui %19, %20 : vector<1x100xi32>
    %c1065353216_i32 = arith.constant 1065353216 : i32
    %22 = vector.broadcast %c1065353216_i32 : i32 to vector<1x100xi32>
    %23 = arith.ori %21, %22 : vector<1x100xi32>
    %24 = tpu.bitcast %23 : vector<1x100xi32> -> vector<1x100xf32>
    %cst = arith.constant 1.000000e+00 : f32
    %25 = vector.broadcast %cst : f32 to vector<1x100xf32>
    %26 = arith.subf %24, %25 : vector<1x100xf32>
    %c0_1 = arith.constant 0 : index
    %c0_2 = arith.constant 0 : index
    %27 = vector.load %arg1[%c0_1, %c0_2] : memref<1x100xf32, #tpu.memory_space<vmem>>, vector<1x100xf32>
    %cst_3 = arith.constant 0.00999999977 : f32
    %28 = vector.broadcast %cst_3 : f32 to vector<1x100xf32>
    %29 = arith.mulf %26, %28 : vector<1x100xf32>
    %30 = arith.addf %27, %29 : vector<1x100xf32>
    %c0_4 = arith.constant 0 : index
    %c0_5 = arith.constant 0 : index
    %31 = vector.load %arg2[%c0_4, %c0_5] : memref<1x100xf32, #tpu.memory_space<vmem>>, vector<1x100xf32>
    tpu.vector_store %arg2[%c0_4, %c0_5], %30 {strides = array<i32>} : memref<1x100xf32, #tpu.memory_space<vmem>>, vector<1x100xf32>,
    %32 = vector.shape_cast %30 : vector<1x100xf32> to vector<1x1x100xf32>
    %cst_6 = arith.constant dense<0.000000e+00> : vector<1xf32>
    %33 = vector.multi_reduction <add>, %32, %cst_6 [1, 2] : vector<1x1x100xf32> to vector<1xf32>
    %34 = vector.shape_cast %33 : vector<1xf32> to vector<1x1x1xf32>
    %35 = vector.extract %34[0, 0, 0] : f32 from vector<1x1x1xf32>
    %36 = vector.broadcast %35 : f32 to vector<1x1xf32>
    %37 = math.absf %36 : vector<1x1xf32>
    %c0_7 = arith.constant 0 : index
    %c0_8 = arith.constant 0 : index
    %38 = vector.load %arg3[%c0_7, %c0_8] : memref<1x1xf32, #tpu.memory_space<vmem>>, vector<1x1xf32>
    tpu.vector_store %arg3[%c0_7, %c0_8], %37 {strides = array<i32>} : memref<1x1xf32, #tpu.memory_space<vmem>>, vector<1x1xf32>,
    return
  }
}

</mosaic_0001>

<bundles_post_ra>
// kernel: tpu_custom_call.1
= control target key start
LH: loop header
LB: loop body
LE: loop exit
PB: predicated region body
PF: predicated region fallthrough
CT: control target
= control target key end

     0   :  { %10 = vsyncpa [#allocation4], 0  ;;  %v17_v0 = vlaneseq  ;;  %s165_s0 = inlined_call_operand.<no memory space> [shape: s32[1], index: 0, kind: input, shape index: {}]   ;;  %s166_s1 = inlined_call_operand.vmem [shape: f32[1,100], index: 1, kind: input, shape index: {}]   ;;  %s167_s2 = inlined_call_operand.hbm [shape: f32[1,100], index: 2, kind: output, shape index: {0}]   ;;  %s168_s3 = inlined_call_operand.hbm [shape: f32[1,1], index: 3, kind: output, shape index: {1}]  }
   0x1   :  { %s20_s14 = smul.u32 2246822507, %s165_s0 }
   0x2   :  { %11 = vsyncpa [#allocation6], 0  ;;  %v18_v1 = vand.u32 127, %v17_v0  ;;  %v35_v16 = vld [vmem:[%s166_s1] sm:$0x1]  ;;  %vm38_vm0 = vcmask 811008  }
   0x3   :  { %v21_v2 = vstv %s20_s14  ;;  %s131_s0 = smov [#allocation3]  }
   0x4   :  { %v19_v3 = vmul.u32 2654435769, %v18_v1  ;;  %s60_s17 = sshll.u32 %s131_s0, 4  ;;  %s61_s17 = int_to_ptr.vmem [resolvable:$true] %s60_s17 }
   0x5   :  { %s87_s18 = scalar_lea.vmem %s61_s17, 16  ;;  %s91_s19 = scalar_lea.vmem %s61_s17, 32 }
   0x6   :  { %v22_v4 = vadd.s32 %v21_v2, %v19_v3  ;;  %p88_p0 = scmp.ne.s32.totalorder %s61_s17, %s87_s18  ;;  %p92_p1 = scmp.lt.s32.totalorder %s61_s17, %s61_s17 }
   0x7   :  { %p93_p2 = scmp.lt.s32.totalorder %s91_s19, %s87_s18 }
   0x8   :  { %v23_v5 = vshrl.u32 %v22_v4, 16 }
   0x9   :  { %p94_p3 = por %p93_p2, %p92_p1 }
   0xa   :  { %v24_v6 = vxor.u32 %v23_v5, %v22_v4 }
   0xb   :  { %p95_p4 = pnand %p94_p3, %p88_p0 }
   0xc   :  { %v25_v7 = vmul.u32 2146121005, %v24_v6 }
   0xe   :  { %v26_v8 = vshrl.u32 %v25_v7, 15 }
  0x10   :  { %v27_v9 = vxor.u32 %v26_v8, %v25_v7 }
  0x12   :  { %v28_v10 = vmul.u32 2221713035, %v27_v9 }
  0x14   :  { %v29_v11 = vshrl.u32 %v28_v10, 16 }
  0x16   :  { %v30_v12 = vxor.u32 %v29_v11, %v28_v10 }
  0x18   :  { %v31_v13 = vshrl.u32 %v30_v12, 9 }
  0x1a   :  { %v32_v14 = vor.u32 1065353216, %v31_v13 }
  0x1c   :  { %v82_v15 = vadd.f32 -1.0, %v32_v14 }
  0x1e   :  { %v36_v17 = vmul.f32 0.01, %v82_v15 }
  0x20   :  { %v37_v18 = vadd.f32 %v36_v17, %v35_v16 }
  0x22   :  { %v40_v19 = vsel %vm38_vm0, %v37_v18, 0.0  ;;  %39 = vst.msk [vmem:[#allocation3] sm:$0x1] %vm38_vm0, %v37_v18 }
  0x23   :  { %41 = vadd.xlane.f32.xlu0 %v40_v19 }
  0x24   :  { %98 = shalt.err (!%p95_p4)
}
  0x25   :  { %63 = dma.vmem_to_hbm [thread:$0]  %s61_s17, 16, %s167_s2, [#allocation4]   ;;  %vm52_vm1 = vcmask 0  }
  0x26   :  { %s132_s1 = smov [#allocation5]  }
  0x27   :  { %s70_s22 = sshll.u32 %s132_s1, 4  ;;  %s71_s22 = int_to_ptr.vmem [resolvable:$true] %s70_s22 }
  0x28   :  { %s107_s24 = scalar_lea.vmem %s71_s22, 16  ;;  %s111_s25 = scalar_lea.vmem %s71_s22, 32 }
  0x29   :  { %p108_p5 = scmp.ne.s32.totalorder %s71_s22, %s107_s24  ;;  %p112_p6 = scmp.lt.s32.totalorder %s71_s22, %s71_s22 }
  0x2a   :  { %p113_p7 = scmp.lt.s32.totalorder %s111_s25, %s107_s24 }
  0x2c   :  { %p114_p8 = por %p113_p7, %p112_p6 }
  0x2e   :  { %p115_p9 = pnand %p114_p8, %p108_p5 }
  0xac   :  { %v42_v20 = vpop.xlane.xlu0 %41 }
  0xad   :  { %v43_v21 = vrot.slane %v42_v20, 4 }
  0xaf   :  { %v44_v22 = vadd.f32 %v43_v21, %v42_v20 }
  0xb1   :  { %v45_v23 = vrot.slane %v44_v22, 2 }
  0xb3   :  { %v46_v24 = vadd.f32 %v45_v23, %v44_v22 }
  0xb5   :  { %v47_v25 = vrot.slane %v46_v24, 1 }
  0xb7   :  { %v48_v26 = vadd.f32 %v47_v25, %v46_v24 }
  0xb9   :  { %83 = vpush %v48_v26 }
  0xea   :  { %s84_s23 = spop %83 }
  0xeb   :  { %v50_v27 = vstv %s84_s23 }
  0xec   :  { %v51_v28 = vand.u32 2147483647, %v50_v27 }
  0xee   :  { %53 = vst.msk [vmem:[#allocation5] sm:$0x1] %vm52_vm1, %v51_v28 }
  0xef   :  { %118 = shalt.err (!%p115_p9)
}
  0xf0   :  { %73 = dma.vmem_to_hbm [thread:$0]  %s71_s22, 16, %s168_s3, [#allocation6]  }
  0xf1   :  { %127 = dma.done.wait [#allocation4], 16  }
  0xf2   :  { %128 = vsyncadd [#allocation4], 4294967280 }
  0xf3   :  { %129 = dma.done.wait [#allocation6], 16  }
  0xf4   :  { %130 = vsyncadd [#allocation6], 4294967280 }
  0xf5   :  { %80 = vsyncpa [#allocation4], 1 }
  0xf6   :  { %81 = vsyncpa [#allocation6], 1 }

</bundles_post_ra>
